<compile_context>
chip_gen: v6e
topology: v6e:2x2x1
jax: 0.10.0
libtpu: 0.0.40
codegen_flags: <defaults>
</compile_context>

<pallas_src>
import numpy as np
import jax
import jax.numpy as jnp
from jax.experimental import pallas as pl
from jax.experimental.pallas import tpu as pltpu

BN_EPS = 1e-5
LEAKY_SLOPE = 0.2


def _pad128(n):
    return ((n + 127) // 128) * 128


def _leaky(h):
    return jnp.where(h > 0, h, LEAKY_SLOPE * h)


def _bn_leaky_folded(h, gamma, beta, inv_b):
    # PyTorch BatchNorm1d (training): biased variance over the batch axis.
    # Two-pass stats, folded into one scale/shift, fused LeakyReLU.
    mean = jnp.sum(h, axis=0, keepdims=True) * inv_b
    d = h - mean
    var = jnp.sum(d * d, axis=0, keepdims=True) * inv_b
    scale = jax.lax.rsqrt(var + BN_EPS) * gamma          # rsqrt -> EUP slot
    shift = beta - mean * scale
    y = h * scale + shift
    return jnp.where(y > 0, y, LEAKY_SLOPE * y)


# ---------------------------------------------------------------------------
# Kernel A: K-streamed first Linear, column-split over H1, bias+LeakyReLU
# fused into the last K step.  Grid = (nj, nk); j is "parallel" (megacore on
# v7x), k is the "arbitrary" reduction axis with an f32 VMEM accumulator.
# ---------------------------------------------------------------------------
def _stream_kernel(x_ref, w1_ref, b1_ref, h_ref, acc_ref):
    k = pl.program_id(1)

    @pl.when(k == 0)
    def _():
        acc_ref[...] = jnp.zeros_like(acc_ref)

    # bf16 operands (x cast in-kernel -> no wrapper-side HBM pass), f32 acc.
    acc_ref[...] += jnp.dot(x_ref[...].astype(jnp.bfloat16), w1_ref[...],
                            preferred_element_type=jnp.float32)

    @pl.when(k == pl.num_programs(1) - 1)
    def _():
        h = acc_ref[...] + b1_ref[...]
        h_ref[...] = jnp.where(h > 0, h, LEAKY_SLOPE * h)


# ---------------------------------------------------------------------------
# Kernel B: tiny resident epilogue -- Linear+BN+LeakyReLU x2 and the
# lane-padded head.  Everything fits in VMEM; single grid point.
# ---------------------------------------------------------------------------
def _make_epilogue_kernel(B, H2, H3, Lp, offs):
    o_g2, o_be2, o_g3, o_be3, o_b4 = offs
    inv_b = 1.0 / float(B)

    def kernel(h_ref, w2_ref, w3_ref, w4_ref, p_ref, o_ref):
        p = p_ref[...]                       # (1, P) packed f32 per-feature params
        g2 = p[:, o_g2:o_g2 + H2]
        be2 = p[:, o_be2:o_be2 + H2]
        g3 = p[:, o_g3:o_g3 + H3]
        be3 = p[:, o_be3:o_be3 + H3]
        b4 = p[:, o_b4:o_b4 + Lp]

        h = h_ref[...]                       # (B, H1) f32, bias+LeakyReLU already applied

        # Block 2: Linear (bias dropped: cancelled by BN) + BN + LeakyReLU
        h = jnp.dot(h.astype(jnp.bfloat16), w2_ref[...],
                    preferred_element_type=jnp.float32)
        h = _bn_leaky_folded(h, g2, be2, inv_b)

        # Block 3: Linear + BN + LeakyReLU
        h = jnp.dot(h.astype(jnp.bfloat16), w3_ref[...],
                    preferred_element_type=jnp.float32)
        h = _bn_leaky_folded(h, g3, be3, inv_b)

        # Head: lane-padded (Lp multiple of 128) so stores are unmasked.
        o_ref[...] = jnp.dot(h.astype(jnp.bfloat16), w4_ref[...],
                             preferred_element_type=jnp.float32) + b4

    return kernel


# ---------------------------------------------------------------------------
# Parameter init (PyTorch Linear defaults, f32) and one-time preparation.
# ---------------------------------------------------------------------------
def init_params(key, in_dim, first_hidden_dim, latent_dim):
    """PyTorch-faithful f32 parameters (Linear U[-1/sqrt(fan_in), +], BN 1/0)."""
    dims = [in_dim, first_hidden_dim, first_hidden_dim // 2,
            first_hidden_dim // 4, latent_dim]
    params = {}
    keys = jax.random.split(key, 2 * (len(dims) - 1))
    for i in range(len(dims) - 1):
        fan_in, fan_out = dims[i], dims[i + 1]
        bound = 1.0 / np.sqrt(fan_in)
        params[f"w{i+1}"] = jax.random.uniform(
            keys[2 * i], (fan_in, fan_out), jnp.float32, -bound, bound)
        params[f"b{i+1}"] = jax.random.uniform(
            keys[2 * i + 1], (1, fan_out), jnp.float32, -bound, bound)
    params["g2"] = jnp.ones((1, dims[2]), jnp.float32)
    params["be2"] = jnp.zeros((1, dims[2]), jnp.float32)
    params["g3"] = jnp.ones((1, dims[3]), jnp.float32)
    params["be3"] = jnp.zeros((1, dims[3]), jnp.float32)
    return params


def prepare_encoder_params(params, latent_dim):
    """One-time (outside the hot path): bf16 casts, w1 K-pad, w4 lane-pad,
    packing of the small per-feature vectors into one 128-aligned f32 row."""
    in_dim, H1 = params["w1"].shape
    H2 = params["w2"].shape[1]
    H3 = params["w3"].shape[1]
    Lp = _pad128(latent_dim)
    k_pad = _pad128(in_dim)

    w1 = params["w1"].astype(jnp.bfloat16)            # bf16: halves HBM traffic
    if k_pad != in_dim:                                # zero pad along K is exact
        w1 = jnp.pad(w1, ((0, k_pad - in_dim), (0, 0)))
    w2 = params["w2"].astype(jnp.bfloat16)
    w3 = params["w3"].astype(jnp.bfloat16)
    w4 = jnp.pad(params["w4"], ((0, 0), (0, Lp - latent_dim))).astype(jnp.bfloat16)
    b1 = params["b1"].reshape(1, H1).astype(jnp.float32)

    # Pack (g2, be2, g3, be3, b4) with 128-aligned segments -> one resident DMA.
    # (b2/b3 intentionally omitted: BatchNorm cancels per-feature constant bias.)
    P2, P3 = _pad128(H2), _pad128(H3)
    vals = [params["g2"], params["be2"], params["g3"], params["be3"], params["b4"]]
    widths = [P2, P2, P3, P3, Lp]
    segs, offs, off = [], [], 0
    for v, w in zip(vals, widths):
        v = v.reshape(1, -1).astype(jnp.float32)
        segs.append(jnp.pad(v, ((0, 0), (0, w - v.shape[1]))))
        offs.append(off)
        off += w
    packed = jnp.concatenate(segs, axis=1)

    return dict(w1=w1, w2=w2, w3=w3, w4=w4, b1=b1, packed=packed,
                offs=tuple(offs), in_dim=in_dim, k_pad=k_pad,
                dims=(H1, H2, H3), latent_dim=latent_dim, Lp=Lp)


# ---------------------------------------------------------------------------
# Trace-time helpers (pure Python arithmetic -- no per-call XLA ops).
# ---------------------------------------------------------------------------
def _vmem_budget_bytes():
    phys = 64 << 20                                    # conservative fallback
    try:
        info = pltpu.get_tpu_info()
        phys = int(getattr(info, "vmem_capacity_bytes", phys))
    except Exception:
        pass
    # ~96 MiB on v5e/v6e (128 MiB physical), ~48 MiB on v7x (64 MiB per TC).
    return min(phys * 3 // 4, 100 << 20)


def _pick_tk(k_pad, B, tj, budget, target, nbuf):
    """Largest 128-multiple divisor of k_pad with tk <= target whose
    double-buffered working set (incl. f32 x tiles and accumulator) fits."""
    m = k_pad // 128
    best = 128
    for d in range(1, m + 1):
        cand = d * 128
        if cand > target:
            break
        if m % d:
            continue
        need = (nbuf * B * cand * 4      # x tiles (f32, cast in-kernel)
                + nbuf * cand * tj * 2   # w1 tiles (bf16)
                + 2 * tj * 4             # b1
                + 2 * B * tj * 4         # output tiles
                + B * tj * 4)            # accumulator scratch
        if need * 1.25 <= budget:
            best = cand
    return best


# ---------------------------------------------------------------------------
# Forward pass.
# ---------------------------------------------------------------------------
def basic_encoder(x, prep, *, tk=None, extra_buffering=False):
    """x: (B, C, H, W) float32; prep: prepare_encoder_params(...) output.
    Returns (B, latent_dim) float32."""
    B = x.shape[0]
    xf = x.reshape(B, -1)                       # f32; bf16 cast happens in-kernel
    in_dim, k_pad = prep["in_dim"], prep["k_pad"]
    H1, H2, H3 = prep["dims"]
    Lp, latent_dim = prep["Lp"], prep["latent_dim"]
    assert xf.shape[1] == in_dim

    if k_pad != in_dim:
        # Fallback only when in_dim is not a multiple of 128 (costs one extra
        # HBM pass over x); pre-pad x outside the hot loop to avoid it.
        xf = jnp.pad(xf, ((0, 0), (0, k_pad - in_dim)))

    budget = _vmem_budget_bytes()

    # Column split of the first Linear -> leading "parallel" axis; on v7x the
    # two halves run on the two TensorCores (each with its own HBM path).
    nj = 2 if (H1 % 256 == 0) else 1
    tj = H1 // nj

    # K tile: generation-aware target, B-adaptive, must divide k_pad.
    nbuf = 3 if extra_buffering else 2
    target = 16384 if budget >= (80 << 20) else 8192
    if tk is not None:
        target = max(128, (int(tk) // 128) * 128)
    tk = _pick_tk(k_pad, B, tj, budget, target, nbuf)
    nk = k_pad // tk

    # Real working-set estimate + 25% headroom (no blanket 4x factor).
    need_a = (nbuf * B * tk * 4 + nbuf * tk * tj * 2 + 2 * tj * 4
              + 2 * B * tj * 4 + B * tj * 4)
    vmem_a = int(min(max(int(need_a * 1.25), 8 << 20), budget))

    if extra_buffering:
        # Only if profiling shows exposed DMA at step boundaries.
        x_spec = pl.BlockSpec((B, tk), lambda j, k: (0, k),
                              pipeline_mode=pl.Buffered(3))
        w1_spec = pl.BlockSpec((tk, tj), lambda j, k: (k, j),
                               pipeline_mode=pl.Buffered(3))
    else:
        x_spec = pl.BlockSpec((B, tk), lambda j, k: (0, k))
        w1_spec = pl.BlockSpec((tk, tj), lambda j, k: (k, j))

    h1 = pl.pallas_call(
        _stream_kernel,
        out_shape=jax.ShapeDtypeStruct((B, H1), jnp.float32),
        grid_spec=pltpu.PrefetchScalarGridSpec(
            num_scalar_prefetch=0,
            grid=(nj, nk),
            in_specs=[x_spec,
                      w1_spec,
                      pl.BlockSpec((1, tj), lambda j, k: (0, j))],
            out_specs=pl.BlockSpec((B, tj), lambda j, k: (0, j)),
            scratch_shapes=[pltpu.VMEM((B, tj), jnp.float32)]),
        compiler_params=pltpu.CompilerParams(
            dimension_semantics=("parallel", "arbitrary"),
            vmem_limit_bytes=vmem_a),
        cost_estimate=pl.CostEstimate(
            flops=2 * B * k_pad * H1,
            transcendentals=0,
            bytes_accessed=nj * B * k_pad * 4 + k_pad * H1 * 2 + B * H1 * 4),
    )(xf, prep["w1"], prep["b1"])

    # ---- tiny resident epilogue kernel -------------------------------------
    P = prep["packed"].shape[1]
    kernel_b = _make_epilogue_kernel(B, H2, H3, Lp, prep["offs"])
    need_b = (2 * (B * H1 * 4 + H1 * H2 * 2 + H2 * H3 * 2 + H3 * Lp * 2
                   + P * 4 + B * Lp * 4)
              + 8 * B * H1 * 4)                 # f32 temporaries inside the body
    vmem_b = int(min(max(int(need_b * 3 // 2), 8 << 20), budget))

    out = pl.pallas_call(
        kernel_b,
        out_shape=jax.ShapeDtypeStruct((B, Lp), jnp.float32),
        grid_spec=pltpu.PrefetchScalarGridSpec(
            num_scalar_prefetch=0,
            grid=(1,),
            in_specs=[pl.BlockSpec((B, H1), lambda i: (0, 0)),
                      pl.BlockSpec((H1, H2), lambda i: (0, 0)),
                      pl.BlockSpec((H2, H3), lambda i: (0, 0)),
                      pl.BlockSpec((H3, Lp), lambda i: (0, 0)),
                      pl.BlockSpec((1, P), lambda i: (0, 0))],
            out_specs=pl.BlockSpec((B, Lp), lambda i: (0, 0))),
        compiler_params=pltpu.CompilerParams(
            dimension_semantics=("arbitrary",),
            vmem_limit_bytes=vmem_b),
        cost_estimate=pl.CostEstimate(
            flops=2 * B * (H1 * H2 + H2 * H3 + H3 * Lp),
            transcendentals=H2 + H3,
            bytes_accessed=(B * H1 * 4 + (H1 * H2 + H2 * H3 + H3 * Lp) * 2
                            + P * 4 + B * Lp * 4)),
    )(h1, prep["w2"], prep["w3"], prep["w4"], prep["packed"])

    return out[:, :latent_dim]


# ---------------------------------------------------------------------------
# Pure-JAX reference: PyTorch-faithful math (including b2/b3 biases and
# un-folded training-mode BatchNorm), mirroring the kernel's bf16 matmul
# operands / f32 accumulation.
# ---------------------------------------------------------------------------
def basic_encoder_ref(x, params):
    def mm(h, w):
        return jnp.dot(h.astype(jnp.bfloat16), w.astype(jnp.bfloat16),
                       preferred_element_type=jnp.float32)

    def bn(h, gamma, beta):
        mean = jnp.mean(h, axis=0, keepdims=True)
        var = jnp.mean((h - mean) ** 2, axis=0, keepdims=True)
        return (h - mean) * jax.lax.rsqrt(var + BN_EPS) * gamma + beta

    h = x.reshape(x.shape[0], -1)
    h = _leaky(mm(h, params["w1"]) + params["b1"])
    h = _leaky(bn(mm(h, params["w2"]) + params["b2"], params["g2"], params["be2"]))
    h = _leaky(bn(mm(h, params["w3"]) + params["b3"], params["g3"], params["be3"]))
    return mm(h, params["w4"]) + params["b4"]


if __name__ == "__main__":
    latent_dim = 8
    img_dim = (4, 16, 16)          # flattened feature dim = 1024
    first_hidden_dim = 256
    B = 8

    key = jax.random.PRNGKey(0)
    k_x, k_p = jax.random.split(key)
    x = jax.random.normal(k_x, (B,) + img_dim, dtype=jnp.float32)
    params = init_params(k_p, int(np.prod(img_dim)), first_hidden_dim, latent_dim)

    # One-time preparation (bf16 casts / padding / packing) -- outside hot path.
    prep = prepare_encoder_params(params, latent_dim)

    # tk=256 -> a 4-step K grid and a 2-way column split at this toy size,
    # exercising the streamed accumulator + parallel-axis path (for large
    # images the generation-aware default tk of 8192/16384 is used).
    out = basic_encoder(x, prep, latent_dim and latent_dim * 0 + None if False else None, tk=256) \
        if False else basic_encoder(x, prep, tk=256)
    out = jax.block_until_ready(out)

    ref = basic_encoder_ref(x, params)
    np.testing.assert_allclose(np.asarray(out), np.asarray(ref), rtol=2e-3, atol=2e-3)

    print("KERNEL_OK")
</pallas_src>

<mosaic_0001>
module attributes {stable_mosaic.version = 11 : i64} {
  func.func @_stream_kernel(%arg0: i32, %arg1: i32, %arg2: memref<8x256xf32, #tpu.memory_space<vmem>>, %arg3: memref<256x128xbf16, #tpu.memory_space<vmem>>, %arg4: memref<1x128xf32, #tpu.memory_space<vmem>>, %arg5: memref<8x128xf32, #tpu.memory_space<vmem>>, %arg6: memref<8x128xf32, #tpu.memory_space<vmem>>) attributes {dimension_semantics = [#tpu.dimension_semantics<parallel>, #tpu.dimension_semantics<arbitrary>], iteration_bounds = array<i64: 2, 4>, scalar_prefetch = 0 : i64, scratch_operands = 1 : i64, tpu.core_type = #tpu.core_type<tc>, window_params = [{transform_indices = @transform_0, window_bounds = array<i64: 8, 256>}, {transform_indices = @transform_1, window_bounds = array<i64: 256, 128>}, {transform_indices = @transform_2, window_bounds = array<i64: 1, 128>}, {transform_indices = @transform_3, window_bounds = array<i64: 8, 128>}]} {
    %c0_i32 = arith.constant 0 : i32
    %0 = arith.cmpi eq, %arg1, %c0_i32 : i32
    %1 = arith.extui %0 : i1 to i32
    %c0_i32_0 = arith.constant 0 : i32
    %2 = arith.cmpi ne, %1, %c0_i32_0 : i32
    scf.if %2 {
      %cst_9 = arith.constant 0.000000e+00 : f32
      %13 = vector.broadcast %cst_9 : f32 to vector<8x128xf32>
      %c0_10 = arith.constant 0 : index
      %c0_11 = arith.constant 0 : index
      %14 = vector.load %arg6[%c0_10, %c0_11] : memref<8x128xf32, #tpu.memory_space<vmem>>, vector<8x128xf32>
      tpu.vector_store %arg6[%c0_10, %c0_11], %13 {strides = array<i32>} : memref<8x128xf32, #tpu.memory_space<vmem>>, vector<8x128xf32>,
    } else {
    }
    %c0 = arith.constant 0 : index
    %c0_1 = arith.constant 0 : index
    %3 = vector.load %arg6[%c0, %c0_1] : memref<8x128xf32, #tpu.memory_space<vmem>>, vector<8x128xf32>
    %c0_2 = arith.constant 0 : index
    %c0_3 = arith.constant 0 : index
    %4 = vector.load %arg2[%c0_2, %c0_3] : memref<8x256xf32, #tpu.memory_space<vmem>>, vector<8x256xf32>
    %5 = arith.truncf %4 : vector<8x256xf32> to vector<8x256xbf16>
    %c0_4 = arith.constant 0 : index
    %c0_5 = arith.constant 0 : index
    %6 = vector.load %arg3[%c0_4, %c0_5] : memref<256x128xbf16, #tpu.memory_space<vmem>>, vector<256x128xbf16>
    %cst = arith.constant dense<0.000000e+00> : vector<8x128xf32>
    %7 = tpu.matmul %5, %6, %cst {dimension_numbers = #tpu.dot_dimension_numbers<[1], [0], [0], [1], [0, 0, 1, 1], [], []>} : vector<8x256xbf16>, vector<256x128xbf16>, vector<8x128xf32> -> vector<8x128xf32>
    %8 = arith.addf %3, %7 : vector<8x128xf32>
    %c0_6 = arith.constant 0 : index
    %c0_7 = arith.constant 0 : index
    %9 = vector.load %arg6[%c0_6, %c0_7] : memref<8x128xf32, #tpu.memory_space<vmem>>, vector<8x128xf32>
    tpu.vector_store %arg6[%c0_6, %c0_7], %8 {strides = array<i32>} : memref<8x128xf32, #tpu.memory_space<vmem>>, vector<8x128xf32>,
    %c3_i32 = arith.constant 3 : i32
    %10 = arith.cmpi eq, %arg1, %c3_i32 : i32
    %11 = arith.extui %10 : i1 to i32
    %c0_i32_8 = arith.constant 0 : i32
    %12 = arith.cmpi ne, %11, %c0_i32_8 : i32
    scf.if %12 {
      %c0_9 = arith.constant 0 : index
      %c0_10 = arith.constant 0 : index
      %13 = vector.load %arg6[%c0_9, %c0_10] : memref<8x128xf32, #tpu.memory_space<vmem>>, vector<8x128xf32>
      %c0_11 = arith.constant 0 : index
      %c0_12 = arith.constant 0 : index
      %14 = vector.load %arg4[%c0_11, %c0_12] : memref<1x128xf32, #tpu.memory_space<vmem>>, vector<1x128xf32>
      %15 = vector.broadcast %14 : vector<1x128xf32> to vector<8x128xf32>
      %16 = arith.addf %13, %15 : vector<8x128xf32>
      %cst_13 = arith.constant 0.000000e+00 : f32
      %17 = vector.broadcast %cst_13 : f32 to vector<8x128xf32>
      %18 = arith.cmpf ogt, %16, %17 : vector<8x128xf32>
      %cst_14 = arith.constant 2.000000e-01 : f32
      %19 = vector.broadcast %cst_14 : f32 to vector<8x128xf32>
      %20 = arith.mulf %19, %16 : vector<8x128xf32>
      %21 = arith.select %18, %16, %20 : vector<8x128xi1>, vector<8x128xf32>
      %c0_15 = arith.constant 0 : index
      %c0_16 = arith.constant 0 : index
      %22 = vector.load %arg5[%c0_15, %c0_16] : memref<8x128xf32, #tpu.memory_space<vmem>>, vector<8x128xf32>
      tpu.vector_store %arg5[%c0_15, %c0_16], %21 {strides = array<i32>} : memref<8x128xf32, #tpu.memory_space<vmem>>, vector<8x128xf32>,
    } else {
    }
    return
  }
  func.func @transform_0(%arg0: i32, %arg1: i32) -> (i32, i32) {
    %c0_i32 = arith.constant 0 : i32
    %c0_i32_0 = arith.constant 0 : i32
    return %c0_i32, %arg1 : i32, i32
  }
  func.func @transform_1(%arg0: i32, %arg1: i32) -> (i32, i32) {
    %c0_i32 = arith.constant 0 : i32
    return %arg1, %arg0 : i32, i32
  }
  func.func @transform_2(%arg0: i32, %arg1: i32) -> (i32, i32) {
    %c0_i32 = arith.constant 0 : i32
    %c0_i32_0 = arith.constant 0 : i32
    return %c0_i32, %arg0 : i32, i32
  }
  func.func @transform_3(%arg0: i32, %arg1: i32) -> (i32, i32) {
    %c0_i32 = arith.constant 0 : i32
    %c0_i32_0 = arith.constant 0 : i32
    return %c0_i32, %arg0 : i32, i32
  }
}

</mosaic_0001>

<bundles_post_ra>
// kernel: tpu_custom_call.1
= control target key start
LH: loop header
LB: loop body
LE: loop exit
PB: predicated region body
PF: predicated region fallthrough
CT: control target
= control target key end

     0   :  { %s1351_s0 = inlined_call_operand.hbm [shape: f32[8,1024], index: 0, kind: input, shape index: {}]   ;;  %s1352_s1 = inlined_call_operand.hbm [shape: bf16[1024,256], index: 1, kind: input, shape index: {}]   ;;  %s1353_s2 = inlined_call_operand.vmem [shape: f32[1,256], index: 2, kind: input, shape index: {}]   ;;  %s1354_s3 = inlined_call_operand.hbm [shape: f32[8,256], index: 3, kind: output, shape index: {}]  }
   0x1   :  { %1363 = sst [smem:[#allocation21_spill]] %s1351_s0 }
   0x2   :  { %8 = vsyncpa [#allocation4], 0 }
   0x3   :  { %10 = vsyncpa [#allocation4 + $0x1], 0 }
   0x4   :  { %11 = vsyncpa [#allocation7], 0 }
   0x5   :  { %13 = vsyncpa [#allocation7 + $0x1], 0 }
   0x6   :  { %14 = vsyncpa [#allocation5], 0 }
   0x7   :  { %16 = vsyncpa [#allocation5 + $0x1], 0  ;;  %s1032_s12 = smov 0   ;;  %s1034_s13 = smov 0  }
   0x8   :  { %s1036_s14 = smov 0   ;;  %s1038_s15 = smov 0  }
   0x9   :  { %s1040_s16 = smov 0   ;;  %s1042_s17 = smov 0  }
   0xa   :  { %s1044_s18 = smov 0   ;;  %s1046_s19 = smov 0  }
   0xb   :  { %s1048_s20 = smov 0   ;;  %s1050_s21 = smov 0  }
   0xc   :  { %s1052_s22 = smov 0   ;;  %s1054_s23 = smov 0  }
   0xd   :  { %s1056_s24 = smov 0   ;;  %s1058_s25 = smov 0  }
   0xe LB: > { %1364 = sst [smem:[#allocation12_spill]] %s959_s14  ;;  %s586_s26 = sadd.s32 4294967295, %s1003_s25   ;;  %s1003_s25 = sphi %s1058_s25, %s22_s25   ;;  %s999_s24 = sphi %s1056_s24, %s1407_s24   ;;  %s995_s23 = sphi %s1054_s23, %s1396_s23   ;;  %s991_s22 = sphi %s1052_s22, %s1406_s22   ;;  %s987_s21 = sphi %s1050_s21, %s1405_s21   ;;  %s983_s20 = sphi %s1048_s20, %s1394_s20   ;;  %s979_s19 = sphi %s1046_s19, %s1404_s19   ;;  %s975_s18 = sphi %s1044_s18, %s1403_s18   ;;  %s971_s17 = sphi %s1042_s17, %s1402_s17   ;;  %s967_s16 = sphi %s1040_s16, %s1401_s16   ;;  %s963_s15 = sphi %s1038_s15, %s1400_s15   ;;  %s959_s14 = sphi %s1036_s14, %s1391_s14   ;;  %s955_s13 = sphi %s1034_s13, %s1399_s13   ;;  %s951_s12 = sphi %s1032_s12, %s1398_s12  }
   0xf   : > { %1365 = sst [smem:[#allocation13_spill]] %s983_s20  ;;  %s31_s28 = sadd.s32 1, %s995_s23 }
  0x10   : > { %1366 = sst [smem:[#allocation14_spill]] %s995_s23  ;;  %s34_s29 = sadd.s32 1, %s999_s24 }
  0x11   : > { %p32_p0 = scmp.ge.s32.totalorder %s31_s28, 4  ;;  %s41_s30 = sadd.s32 1, %s983_s20 }
  0x12   : > { %p48_p1 = scmp.ne.s32.totalorder %s983_s20, %s979_s19  ;;  %p49_p2 = scmp.eq.s32.totalorder %s1003_s25, 0 }
  0x13   : > { %s1409_s28 = smov (%p32_p0, %s31_s28), 0  ;;  %s1411_s29 = smov (!%p32_p0, %s34_s29), %s999_s24 }
  0x14   : > { %1367 = sst [smem:[#allocation15_spill]] %s1409_s28  ;;  %s38_s4 = ssub.s32 %s995_s23, %s1409_s28 }
  0x15   : > { %p1115_p3 = por %p49_p2, %p48_p1  ;;  %p36_p4 = scmp.ge.s32.totalorder %s1411_s29, 2 }
  0x16   : > { %p39_p5 = scmp.eq.s32.totalorder %s38_s4, 0  ;;  %p54_p6 = scmp.ne.s32.totalorder %s979_s19, %s975_s18 }
  0x17   : > { %p1122_p7 = scmp.eq.s32.totalorder %s586_s26, 0  ;;  %s1413_s29 = smov (%p36_p4, %s1411_s29), 0 }
  0x18   : > { %1370 = sst [smem:[#allocation16_spill]] %s1413_s29  ;;  %s65_s9 = ssub.s32 %s999_s24, %s1413_s29 }
  0x19   : > { %s1129_s7 = scalar_select %p39_p5, %s983_s20, %s41_s30  }
  0x1a   : > { %p1133_p8 = por %p1122_p7, %p54_p6  ;;  %s66_s10 = sor.u32 %s65_s9, %s38_s4 }
  0x1b   : > { %1371 = sst [smem:[#allocation17_spill]] %s1129_s7  ;;  %s69_s11 = sadd.s32 1, %s971_s17 }
  0x1c   : > { %p67_p9 = scmp.eq.s32.totalorder %s66_s10, 0  ;;  %p76_p10 = scmp.ne.s32.totalorder %s971_s17, %s967_s16 }
  0x1d   : > { %p82_p11 = scmp.ne.s32.totalorder %s967_s16, %s963_s15  ;;  %p119_p12 = scmp.eq.s32.totalorder %s65_s9, 0 }
  0x1e   : > { %s1145_s18 = scalar_select %p67_p9, %s971_s17, %s69_s11  }
  0x1f   : > { %p1149_p13 = por %p76_p10, %p49_p2  ;;  %p1155_p0 = por %p82_p11, %p1122_p7 }
  0x20   : > { %1373 = sst [smem:[#allocation18_spill]] %s1145_s18  ;;  %s121_s4 = sadd.s32 1, %s959_s14 }
  0x21   : > { %s1375_s27 = scalar_select %p1155_p0, 1, 0 }
  0x22   : > { %p131_p1 = scmp.ne.s32.totalorder %s959_s14, %s955_s13  ;;  %p132_p4 = scmp.eq.s32.totalorder %s586_s26, 7 }
  0x23   : > { %s1163_s10 = scalar_select %p119_p12, %s959_s14, %s121_s4  }
  0x24   : > { %p137_p5 = scmp.ne.s32.totalorder %s955_s13, %s951_s12  ;;  %s1377_s15 = sadd.s32 4294967294, %s1003_s25  }
  0x25   : > { %1376 = sst [smem:[#allocation19_spill]] %s1163_s10  ;;  %p138_p2 = scmp.eq.s32.totalorder %s1377_s15, 7 }
  0x26   : > { %p1171_p6 = por %p132_p4, %p131_p1  ;;  %p665_p7 = scmp.lt.s32.totalorder %s1003_s25, 8 }
  0x27   : > { %p1176_p9 = por %p138_p2, %p137_p5  ;;  %s158_s11 = sand.u32 1, %s983_s20  }
  0x28   : > { %s1378_s9 = scalar_select %p1171_p6, 1, 0 }
  0x29   : > { %s1379_s6 = scalar_select %p1176_p9, 1, 0 }
  0x2a   : > { %s590_s29 = sshll.u32 %s158_s11, 4  ;;  %s624_s4 = sshll.u32 %s995_s23, 8 }
  0x2b   : > { %1380 = sst [smem:[#allocation20_spill]] %s1379_s6  ;;  %s162_s18 = scalar_lea.vmem [#allocation3], %s590_s29 }
  0x2c   : > { %s1381_s0 = sld [smem:[#allocation21_spill]]  ;;  %s170_s10 = sshll.u32 %s162_s18, 4  ;;  %s171_s10 = int_to_ptr.vmem [resolvable:$true] %s170_s10 }
  0x2d   : > { %p1187_p10 = pnand %p665_p7, %p1115_p3  ;;  %s625_s14 = sshll.u32 %s995_s23, 6 }
  0x2e   : > { %p1194_p11 = pnand %p665_p7, %p1149_p13  ;;  %p597_p12 = scmp.ge.s32.totalorder %s1003_s25, 1 }
  0x2f   : > { %s159_s20 = scalar_lea.sflag [#allocation4], %s158_s11  ;;  %p801_p1 = pneg %p1187_p10 }
  0x30   : > { %s812_s28 = scalar_lea.vmem %s171_s10, 256  ;;  %s1005_s29 = smov [#allocation3]  }
  0x31   : > { %p813_p4 = scmp.ne.s32.totalorder %s171_s10, %s812_s28  ;;  %s817_s5 = sshll.u32 %s1005_s29, 4  ;;  %s818_s5 = int_to_ptr.vmem [resolvable:$false] %s817_s5 }
  0x32   : > { %s168_s26 = scalar_lea.hbm %s1381_s0, %s624_s4  ;;  %s819_s7 = scalar_lea.vmem %s818_s5, 512 }
  0x33   : > { %p815_p5 = pnand %p813_p4, %p801_p1  ;;  %p820_p3 = scmp.lt.s32.totalorder %s171_s10, %s818_s5 }
  0x34   : > { %p821_p9 = scmp.lt.s32.totalorder %s819_s7, %s812_s28 }
  0x35   : > { %p816_p2 = pneg %p815_p5 }
  0x36   : > { %p822_p6 = por %p821_p9, %p820_p3 }
  0x38   : > { %p823_p0 = pnand %p822_p6, %p816_p2 }
  0x3a   : > { %826 = shalt.err (!%p823_p0)
}
  0x3b   : > { %657 = dma.hbm_to_vmem [thread:$0]  (!%p1187_p10), %s168_s26, 256, %s171_s10, %s159_s20  }
  0x3c   : > { %p204_p13 = scmp.lt.s32.totalorder %s1003_s25, 9  ;;  %s177_s18 = sand.u32 1, %s971_s17  }
  0x3d   : > { %s187_s30 = sadd.s32 %s999_s24, %s625_s14  ;;  %s593_s4 = sshll.u32 %s177_s18, 7 }
  0x3e   : > { %p1208_p7 = pnand %p597_p12, %p204_p13  ;;  %s596_s28 = sshll.u32 %s187_s30, 6 }
  0x3f   : > { %s189_s15 = scalar_lea.hbm %s1352_s1, %s596_s28  ;;  %s181_s7 = scalar_lea.vmem [#allocation6], %s593_s4 }
  0x40   : > { %s190_s0 = sshll.u32 %s181_s7, 4  ;;  %s178_s23 = scalar_lea.sflag [#allocation7], %s177_s18  ;;  %s191_s0 = int_to_ptr.vmem [resolvable:$true] %s190_s0 }
  0x41   : > { %p829_p0 = pneg %p1194_p11  ;;  %s840_s20 = scalar_lea.vmem %s191_s0, 2048 }
  0x42   : > { %p841_p6 = scmp.ne.s32.totalorder %s191_s0, %s840_s20  ;;  %s1006_s14 = smov [#allocation6]  }
  0x43   : > { %s845_s10 = sshll.u32 %s1006_s14, 4  ;;  %s846_s10 = int_to_ptr.vmem [resolvable:$false] %s845_s10 }
  0x44   : > { %p843_p9 = pnand %p841_p6, %p829_p0  ;;  %s847_s26 = scalar_lea.vmem %s846_s10, 4096 }
  0x45   : > { %p848_p12 = scmp.lt.s32.totalorder %s191_s0, %s846_s10  ;;  %p849_p1 = scmp.lt.s32.totalorder %s847_s26, %s840_s20 }
  0x46   : > { %p844_p10 = pneg %p843_p9 }
  0x47   : > { %p850_p4 = por %p849_p1, %p848_p12 }
  0x49   : > { %p851_p5 = pnand %p850_p4, %p844_p10 }
  0x4b   : > { %854 = shalt.err (!%p851_p5)
}
  0x4c   : > { %s1007_s30 = smov 128   ;;  %s1008_s4 = smov 64  }
  0x4d   : > { %s1009_s28 = smov 4   ;;  %208 = sbr.rel (%p1208_p7) target bundleno = 367 (0x16f), region = 32 }
  0x4e   : > { %660 = dma.hbm_to_vmem [thread:$0]  (!%p1194_p11), %s189_s15, 2048, %s191_s0, %s178_s23, %s1007_s30, %s1008_s4, %s1009_s28  }
  0x4f   : > { %s210_s18 = sand.u32 (!%p1208_p7), 1, %s979_s19  }
  0x50   : > { %s1222_s29 = sshll.u32 (!%p1208_p7), %s210_s18, 4  ;;  %s211_s5 = scalar_lea.sflag (!%p1208_p7), [#allocation4], %s210_s18 }
  0x51   : > { %s214_s7 = scalar_lea.vmem (!%p1208_p7), [#allocation3], %s1222_s29 }
  0x52   : > { %938 = dma.done.wait (%p1133_p8), %s211_s5, 256  }
  0x53   : > { %940 = vsyncadd (%p1133_p8), %s211_s5, 4294967040  ;;  %s219_s6 = sand.u32 1, %s967_s16   ;;  %p1385_p11 = scmp.ne.s32.totalorder %s1375_s27, 0 }
  0x54   : > { %s599_s0 = sshll.u32 %s219_s6, 7  ;;  %s220_s23 = scalar_lea.sflag [#allocation7], %s219_s6 }
  0x55   : > { %s1230_s11 = scalar_lea.vmem [#allocation6], %s599_s0 }
  0x56   : > { %942 = dma.done.wait (%p1385_p11), %s220_s23, 2048  }
  0x57   : > { %944 = vsyncadd (%p1385_p11), %s220_s23, 4294965248  ;;  %s251_s15 = sand.u32 1, %s955_s13   ;;  %p256_p2 = scmp.lt.s32.totalorder %s991_s22, 1 }
  0x58   : > { %s1240_s8 = sshll.u32 %s251_s15, 3  ;;  %p601_p8 = scmp.ne.s32.totalorder %s987_s21, 0 }
  0x59   : > { %s1243_s20 = scalar_select %p256_p2, %s991_s22, 1 }
  0x5a   : > { %s253_s30 = scalar_lea.vmem [#allocation8], %s1240_s8  ;;  %263 = sbr.rel (%p601_p8) target bundleno = 97 (0x61), region = 44 }
  0x5b   : > { %s258_s26 = scalar_lea.vmem %s1353_s2, %s1243_s20 }
  0x5f   : > { %v1010_v0 = vmov 0.0  }
  0x60   : > { %264 = vst [vmem:[#allocation2] sm:$0xff] %v1010_v0 }
  0x61 PF: > { %v783_v1 = vld [vmem:[%s1230_s11 + $0x78] sm:$0xff]   ;;  %v785_v3 = vld [vmem:[%s1230_s11 + $0x70] sm:$0xff]   ;;  %v787_v5 = vld [vmem:[%s1230_s11 + $0x68] sm:$0xff]   ;;  %p618_p3 = scmp.ne.s32.totalorder %s987_s21, 3 }
  0x62   : > { %v784_v2 = vld [vmem:[%s1230_s11 + $0x38] sm:$0xff]   ;;  %626 = vmatprep.subr.bf16.mxu0 %v783_v1  ;;  %v786_v4 = vld [vmem:[%s1230_s11 + $0x30] sm:$0xff]   ;;  %v788_v6 = vld [vmem:[%s1230_s11 + $0x28] sm:$0xff]  }
  0x63   : > { %627 = vmatpush3.bf16.msra.mxu0 %v784_v2  ;;  %v789_v7 = vld [vmem:[%s1230_s11 + $0x60] sm:$0xff]   ;;  %v791_v9 = vld [vmem:[%s1230_s11 + $0x58] sm:$0xff]   ;;  %v793_v11 = vld [vmem:[%s1230_s11 + $0x50] sm:$0xff]  }
  0x64   : > { %628 = vmatprep.subr.bf16.mxu0 %v785_v3  ;;  %v790_v8 = vld [vmem:[%s1230_s11 + $0x20] sm:$0xff]   ;;  %v792_v10 = vld [vmem:[%s1230_s11 + $0x18] sm:$0xff]   ;;  %v794_v14 = vld [vmem:[%s1230_s11 + $0x10] sm:$0xff]  }
  0x65   : > { %v267_v12 = vld [vmem:[%s214_s7 + $0x8] sm:$0xff]  ;;  %v797_v17 = vld [vmem:[%s1230_s11 + $0x40] sm:$0xff]  }
  0x66   : > { %v269_v13 = vpack.c.bf16 %v267_v12, %v267_v12  ;;  %v795_v15 = vld [vmem:[%s1230_s11 + $0x48] sm:$0xff]   ;;  %v798_v18 = vld [vmem:[%s1230_s11] sm:$0xff]  }
  0x67   : > { %629 = vmatpush3.bf16.msra.mxu0 %v786_v4  ;;  %v796_v16 = vld [vmem:[%s1230_s11 + $0x8] sm:$0xff]   ;;  %v266_v19 = vld [vmem:[%s214_s7] sm:$0xff]  ;;  %v265_v22 = vld [vmem:[#allocation2] sm:$0xff] }
  0x68   : > { %630 = vmatprep.subr.bf16.mxu0 %v787_v5  ;;  %430 = vmatprep.mubr.bf16.mxu0 %v269_v13  ;;  %v268_v20 = vpack.c.bf16 %v266_v19, %v266_v19 }
  0x6b   : > { %631 = vmatpush3.bf16.msra.mxu0 %v788_v6 }
  0x6c   : > { %632 = vmatprep.subr.bf16.mxu0 %v789_v7 }
  0x6f   : > { %633 = vmatpush3.bf16.msra.mxu0 %v790_v8 }
  0x70   : > { %634 = vmatprep.subr.bf16.mxu0 %v791_v9 }
  0x73   : > { %635 = vmatpush3.bf16.msra.mxu0 %v792_v10 }
  0x74   : > { %636 = vmatprep.subr.bf16.mxu0 %v793_v11 }
  0x77   : > { %637 = vmatpush3.bf16.msra.mxu0 %v794_v14 }
  0x78   : > { %638 = vmatprep.subr.bf16.mxu0 %v795_v15 }
  0x7b   : > { %639 = vmatpush3.bf16.msra.mxu0 %v796_v16 }
  0x7c   : > { %640 = vmatprep.subr.bf16.mxu0 %v797_v17 }
  0x7f   : > { %641 = vmatpush3.bf16.msra.mxu0 %v798_v18 }
  0x82   : > { %431 = vmatmul.mubr.bf16.vlgmr.msra.gmra.mxu0 %v268_v20 }
 0x142   : > { %v642_v21 = vpop.f32.mrf.mxu0 }
 0x144   : > { %v643_v23 = vpop.f32.mrf.mxu0 }
 0x145   : > { %v644_v24 = vadd.f32 %v643_v23, %v642_v21  ;;  %443 = sbr.rel (%p618_p3) target bundleno = 343 (0x157), region = 48 }
 0x146   : > { %v645_v25 = vpop.f32.mrf.mxu0 }
 0x147   : > { %v438_v26 = vadd.f32 %v644_v24, %v265_v22 }
 0x148   : > { %v646_v27 = vpop.f32.mrf.mxu0 }
 0x149   : > { %439 = vst [vmem:[#allocation2] sm:$0xff] %v438_v26 }
 0x14a   : > { %v619_v29 = vld [vmem:[%s258_s26] ss:$0 sm:$0xff] }
 0x150   : > { %v444_v28 = vld [vmem:[#allocation2] sm:$0xff] }
 0x151   : > { %v452_v30 = vadd.f32 %v619_v29, %v444_v28 }
 0x153   : > { %vm453_vm0 = vcmp.gt.f32.partialorder %v452_v30, 0.0  ;;  %v454_v31 = vmul.f32 0.2, %v452_v30 }
 0x155   : > { %v455_v32 = vsel %vm453_vm0, %v452_v30, %v454_v31 }
 0x156   : > { %456 = vst [vmem:[%s253_s30] sm:$0xff] %v455_v32 }
 0x157 PF: > { %s621_s21 = sshll.u32 %s991_s22, 7  ;;  %s471_s5 = sshll.u32 %s253_s30, 4  ;;  %s472_s5 = int_to_ptr.vmem [resolvable:$true] %s471_s5 }
 0x158   : > { %s469_s29 = scalar_lea.hbm %s1354_s3, %s621_s21  ;;  %s458_s7 = scalar_lea.sflag [#allocation5], %s251_s15 }
 0x159   : > { %s855_s6 = scalar_lea.vmem %s472_s5, 128  ;;  %p1386_p7 = scmp.ne.s32.totalorder %s1378_s9, 0 }
 0x15a   : > { %p856_p13 = scmp.ne.s32.totalorder %s472_s5, %s855_s6  ;;  %s1011_s0 = smov [#allocation8]  }
 0x15b   : > { %s859_s23 = sshll.u32 %s1011_s0, 4  ;;  %s860_s23 = int_to_ptr.vmem [resolvable:$false] %s859_s23 }
 0x15c   : > { %p857_p0 = pnand %p856_p13, %p1386_p7  ;;  %s861_s11 = scalar_lea.vmem %s860_s23, 256 }
 0x15d   : > { %p862_p9 = scmp.lt.s32.totalorder %s472_s5, %s860_s23  ;;  %p863_p10 = scmp.lt.s32.totalorder %s861_s11, %s855_s6 }
 0x15e   : > { %p858_p6 = pneg %p857_p0 }
 0x15f   : > { %p864_p12 = por %p863_p10, %p862_p9 }
 0x161   : > { %p865_p1 = pnand %p864_p12, %p858_p6 }
 0x163   : > { %868 = shalt.err (!%p865_p1)
}
 0x164   : > { %s869_s22 = scalar_lea.hbm %s469_s29, 128  ;;  %s873_s20 = scalar_lea.hbm %s1354_s3, 256 }
 0x165   : > { %p870_p4 = scmp.ne.s32.totalorder %s469_s29, %s869_s22  ;;  %p874_p2 = scmp.lt.s32.totalorder %s469_s29, %s1354_s3 }
 0x166   : > { %p875_p8 = scmp.lt.s32.totalorder %s873_s20, %s869_s22 }
 0x167   : > { %p871_p5 = pnand %p870_p4, %p1386_p7 }
 0x168   : > { %p876_p3 = por %p875_p8, %p874_p2 }
 0x169   : > { %p872_p11 = pneg %p871_p5 }
 0x16b   : > { %p877_p13 = pnand %p876_p3, %p872_p11 }
 0x16d   : > { %880 = shalt.err (!%p877_p13)
}
 0x16e   : > { %652 = dma.vmem_to_hbm [thread:$0]  (%p1386_p7), %s472_s5, 128, %s469_s29, %s458_s7  }
 0x16f PF: > { %s1387_s26 = sld [smem:[#allocation20_spill]]  ;;  %p666_p0 = scmp.ge.s32.totalorder %s1003_s25, 2 }
 0x170   : > { %s483_s30 = sand.u32 1, %s951_s12  }
 0x171   : > { %s484_s27 = scalar_lea.sflag [#allocation5], %s483_s30 }
 0x175   : > { %p1388_p6 = scmp.ne.s32.totalorder %s1387_s26, 0 }
 0x177   : > { %p662_p9 = pnand %p666_p0, %p1388_p6 }
 0x179   : > { %p663_p10 = pneg %p662_p9 }
 0x17b   : > { %946 = dma.done.wait (%p663_p10), %s484_s27, 128  }
 0x17c   : > { %948 = vsyncadd (%p663_p10), %s484_s27, 4294967168  ;;  %s22_s25 = sadd.s32 1, %s1003_s25   ;;  %s1390_s9 = sld [smem:[#allocation12_spill]] }
 0x17d   : > { %p1304_p12 = scmp.ge.s32.totalorder %s22_s25, 10   ;;  %s1391_s14 = sld [smem:[#allocation19_spill]] }
 0x17e   : > { %s1392_s21 = sld [smem:[#allocation18_spill]]  ;;  %s1398_s12 = smov %s955_s13 }
 0x17f   : > { %s1393_s28 = sld [smem:[#allocation13_spill]]  ;;  %s1400_s15 = smov %s967_s16 }
 0x180   : > { %s1394_s20 = sld [smem:[#allocation17_spill]]  ;;  %s1401_s16 = smov %s971_s17 }
 0x181   : > { %s1395_s29 = sld [smem:[#allocation14_spill]]  ;;  %s1403_s18 = smov %s979_s19 }
 0x182   : > { %s1396_s23 = sld [smem:[#allocation15_spill]]  ;;  %s1399_s13 = smov %s1390_s9 }
 0x183   : > { %s1397_s5 = sld [smem:[#allocation16_spill]]  ;;  %s1406_s22 = smov %s999_s24 }
 0x184   : > { %s1402_s17 = smov %s1392_s21 }
 0x185   : > { %s1404_s19 = smov %s1393_s28  ;;  %21 = sbr.rel (!%p1304_p12) target bundleno = 14 (0xe), region = 101 }
 0x187   : > { %s1405_s21 = smov %s1395_s29 }
 0x189   : > { %s1407_s24 = smov %s1397_s5 }
 0x18a   :  { %489 = vsyncpa [#allocation4], 1 }
 0x18b   :  { %491 = vsyncpa [#allocation4 + $0x1], 1 }
 0x18c   :  { %492 = vsyncpa [#allocation7], 1 }
 0x18d   :  { %494 = vsyncpa [#allocation7 + $0x1], 1 }
 0x18e   :  { %495 = vsyncpa [#allocation5], 1 }
 0x18f   :  { %497 = vsyncpa [#allocation5 + $0x1], 1 }

</bundles_post_ra>
